<compile_context>
chip_gen: v5e
topology: v5e:2x2
jax: 0.10.0
libtpu: 0.0.40
codegen_flags: <defaults>
</compile_context>

<pallas_src>
import jax
import jax.numpy as jnp
from jax import lax
from jax.experimental import pallas as pl
from jax.experimental.pallas import tpu as pltpu

EPS = 1e-05


def _make_adv_loss_kernel(c, g, s_valid, eps, needs_mask, unrolled):
    def loop(lo, hi, body, init):
        if unrolled:                      # small C: fully unrolled (LLO visibility)
            val = init
            for i in range(lo, hi):
                val = body(i, val)
            return val
        return lax.fori_loop(lo, hi, body, init)

    def kernel(x_ref, o_ref, e_ref):
        # x_ref: (C, G, 128) native dtype   o_ref: (1, 128) f32
        # e_ref: (C, G, 128) f32 scratch holding the per-channel exp values

        # Pass 1: per-column channel max (stable softmax).
        def max_body(i, m):
            return jnp.maximum(m, x_ref[i].astype(jnp.float32))
        m = loop(1, c, max_body, x_ref[0].astype(jnp.float32))          # (G,128)

        # Pass 2: e_c = exp(x_c - m); accumulate den; stash e_c (no exp recompute).
        def exp_body(i, den):
            ec = jnp.exp(x_ref[i].astype(jnp.float32) - m)
            e_ref[i] = ec
            return den + ec
        den = loop(0, c, exp_body, jnp.zeros((g, 128), jnp.float32))    # (G,128)

        # Pass 3: sum_c log(e_c + eps*den)  (nll never materializes).
        eden = eps * den
        def log_body(i, acc):
            return acc + jnp.log(e_ref[i] + eden)
        lsum = loop(0, c, log_body, jnp.zeros((g, 128), jnp.float32))   # (G,128)

        # sum over channels of -log(softmax + eps), per spatial column
        col = c * jnp.log(den) - lsum                                    # (G,128)

        if needs_mask:
            j = pl.program_id(1)
            last = pl.num_programs(1) - 1

            @pl.when(j == last)          # only the last spatial block pays the mask
            def _():
                gi = lax.broadcasted_iota(jnp.int32, (g, 128), 0)
                li = lax.broadcasted_iota(jnp.int32, (g, 128), 1)
                pos = (j * g + gi) * 128 + li
                masked = jnp.where(pos < s_valid, col, 0.0)
                o_ref[...] = jnp.sum(masked, axis=0, keepdims=True)

            @pl.when(j != last)
            def _():
                o_ref[...] = jnp.sum(col, axis=0, keepdims=True)
        else:
            o_ref[...] = jnp.sum(col, axis=0, keepdims=True)

    return kernel


def adv_loss(inputs_nchw, eps=EPS, block_rows=None):
    """inputs_nchw: (N, C, H, W). Returns scalar float32 loss (== AdvLoss.forward)."""
    n, c, h, w = inputs_nchw.shape
    s = h * w
    itemsize = jnp.dtype(inputs_nchw.dtype).itemsize

    rows = pl.cdiv(s, 128)                       # spatial rows of 128 lanes
    sub = max(8, 32 // itemsize)                 # sublane pack: 8 f32 / 16 bf16 / 32 i8

    # Generation-aware budgets: v5e/v6e have 128 MiB VMEM (use 96 MiB / 8 MiB tiles);
    # v7x and unknown chips get the conservative 48 MiB / 4 MiB (v7x VMEM is 64 MiB).
    kind = ""
    try:
        kind = jax.devices()[0].device_kind.lower()
    except Exception:
        pass
    big_vmem = ("v5" in kind) or ("v6" in kind)
    vmem_limit = (96 << 20) if big_vmem else (48 << 20)
    native_target = (8 << 20) if big_vmem else (4 << 20)

    # VMEM per row-of-128: double-buffered native input + f32 exp scratch + row temps.
    per_g = c * 128 * (2 * itemsize + 4) + 8 * 128 * 4

    if block_rows is not None:                   # explicit override (used by tests)
        g = max(1, min(int(block_rows), rows))
        if g != rows:
            g = max(sub, (g // sub) * sub)
    else:
        native_cap = max(1, native_target // (c * 128 * itemsize))
        budget_cap = max(1, (vmem_limit - (8 << 20)) // per_g)
        g = max(sub, (min(native_cap, budget_cap) // sub) * sub)
        if g >= rows:
            g = rows                             # full extent: always a legal block dim
        elif n < 4:
            # keep >= ~4 grid points so both v7x TensorCores get work
            min_j = pl.cdiv(4, n)
            cap = ((rows // min_j) // sub) * sub
            if cap >= sub:
                g = min(g, cap)
    j_blocks = pl.cdiv(rows, g)

    # Only the s % 128 lane remainder is ever padded; the row overhang of the last
    # block is handled by Pallas' partial trailing block + the in-kernel mask.
    s_lane = rows * 128
    x = inputs_nchw.reshape(n, c, s)
    if s_lane != s:
        x = jnp.pad(x, ((0, 0), (0, 0), (0, s_lane - s)))
    x = x.reshape(n, c, rows, 128)

    needs_mask = (s_lane != s) or (j_blocks * g != rows)
    unrolled = c <= 8
    kernel = _make_adv_loss_kernel(c, g, s, float(eps), needs_mask, unrolled)

    total = n * c * s
    cost = pl.CostEstimate(
        flops=8 * total,
        transcendentals=2 * total + n * s,
        bytes_accessed=total * itemsize + n * j_blocks * 128 * 4,
    )

    # Make sure the limit covers the actual working set (very-large-C corner).
    vmem_limit = max(vmem_limit, g * per_g + (8 << 20))

    partials = pl.pallas_call(
        kernel,
        out_shape=jax.ShapeDtypeStruct((n, j_blocks, 128), jnp.float32),
        grid=(n, j_blocks),
        in_specs=[pl.BlockSpec((None, c, g, 128), lambda i, j: (i, 0, j, 0))],
        out_specs=pl.BlockSpec((None, 1, 128), lambda i, j: (i, j, 0)),
        scratch_shapes=[pltpu.VMEM((c, g, 128), jnp.float32)],
        compiler_params=pltpu.CompilerParams(
            dimension_semantics=("parallel", "parallel"),
            vmem_limit_bytes=int(vmem_limit),
        ),
        cost_estimate=cost,
    )(x)

    # mean over channels then mean over (N, H, W)  ==  full sum / (N*C*H*W)
    return jnp.sum(partials) / total


def _adv_loss_ref(inputs_nchw, eps=EPS):
    """Pure-JAX reference mirroring the PyTorch forward."""
    x = inputs_nchw.astype(jnp.float32)
    p = jax.nn.softmax(x, axis=1)
    return (-jnp.log(p + eps)).mean(axis=1).mean()


if __name__ == "__main__":
    # 1) Main case: H*W % 128 == 0, single full-extent spatial block, no mask path.
    x1 = jax.random.normal(jax.random.PRNGKey(0), (2, 4, 16, 16), dtype=jnp.float32)
    out1 = jax.jit(adv_loss)(x1)
    jax.block_until_ready(out1)
    ref1 = _adv_loss_ref(x1)
    assert jnp.allclose(out1, ref1, atol=1e-5, rtol=1e-4), (out1, ref1)

    # 2) Lane-remainder path: H*W % 128 != 0 -> masked padded lanes on the last block.
    x2 = jax.random.normal(jax.random.PRNGKey(1), (2, 5, 7, 9), dtype=jnp.float32)
    out2 = jax.jit(adv_loss)(x2)
    jax.block_until_ready(out2)
    ref2 = _adv_loss_ref(x2)
    assert jnp.allclose(out2, ref2, atol=1e-5, rtol=1e-4), (out2, ref2)

    # 3) Row-overhang path: last spatial block overhangs the array (no wrapper pad).
    x3 = jax.random.normal(jax.random.PRNGKey(2), (1, 4, 32, 36), dtype=jnp.float32)
    out3 = jax.jit(lambda a: adv_loss(a, block_rows=8))(x3)
    jax.block_until_ready(out3)
    ref3 = _adv_loss_ref(x3)
    assert jnp.allclose(out3, ref3, atol=1e-5, rtol=1e-4), (out3, ref3)

    print("KERNEL_OK")
</pallas_src>

<mosaic_0001>
module attributes {stable_mosaic.version = 11 : i64} {
  func.func @kernel(%arg0: i32, %arg1: i32, %arg2: memref<1x4x2x128xf32, #tpu.memory_space<vmem>>, %arg3: memref<1x1x128xf32, #tpu.memory_space<vmem>>, %arg4: memref<4x2x128xf32, #tpu.memory_space<vmem>>) attributes {dimension_semantics = [#tpu.dimension_semantics<parallel>, #tpu.dimension_semantics<parallel>], iteration_bounds = array<i64: 2, 1>, scalar_prefetch = 0 : i64, scratch_operands = 1 : i64, tpu.core_type = #tpu.core_type<tc>, window_params = [{transform_indices = @transform_0, window_bounds = array<i64: 1, 4, 2, 128>}, {transform_indices = @transform_1, window_bounds = array<i64: 1, 1, 128>}]} {
    %c0 = arith.constant 0 : index
    %c0_0 = arith.constant 0 : index
    %c0_1 = arith.constant 0 : index
    %c0_2 = arith.constant 0 : index
    %0 = vector.load %arg2[%c0, %c0_0, %c0_1, %c0_2] : memref<1x4x2x128xf32, #tpu.memory_space<vmem>>, vector<1x1x2x128xf32>
    %1 = vector.shape_cast %0 : vector<1x1x2x128xf32> to vector<2x128xf32>
    %c0_3 = arith.constant 0 : index
    %c1 = arith.constant 1 : index
    %c0_4 = arith.constant 0 : index
    %c0_5 = arith.constant 0 : index
    %2 = vector.load %arg2[%c0_3, %c1, %c0_4, %c0_5] : memref<1x4x2x128xf32, #tpu.memory_space<vmem>>, vector<1x1x2x128xf32>
    %3 = vector.shape_cast %2 : vector<1x1x2x128xf32> to vector<2x128xf32>
    %4 = arith.maximumf %1, %3 : vector<2x128xf32>
    %c0_6 = arith.constant 0 : index
    %c2 = arith.constant 2 : index
    %c0_7 = arith.constant 0 : index
    %c0_8 = arith.constant 0 : index
    %5 = vector.load %arg2[%c0_6, %c2, %c0_7, %c0_8] : memref<1x4x2x128xf32, #tpu.memory_space<vmem>>, vector<1x1x2x128xf32>
    %6 = vector.shape_cast %5 : vector<1x1x2x128xf32> to vector<2x128xf32>
    %7 = arith.maximumf %4, %6 : vector<2x128xf32>
    %c0_9 = arith.constant 0 : index
    %c3 = arith.constant 3 : index
    %c0_10 = arith.constant 0 : index
    %c0_11 = arith.constant 0 : index
    %8 = vector.load %arg2[%c0_9, %c3, %c0_10, %c0_11] : memref<1x4x2x128xf32, #tpu.memory_space<vmem>>, vector<1x1x2x128xf32>
    %9 = vector.shape_cast %8 : vector<1x1x2x128xf32> to vector<2x128xf32>
    %10 = arith.maximumf %7, %9 : vector<2x128xf32>
    %cst = arith.constant 0.000000e+00 : f32
    %11 = vector.broadcast %cst : f32 to vector<2x128xf32>
    %c0_12 = arith.constant 0 : index
    %c0_13 = arith.constant 0 : index
    %c0_14 = arith.constant 0 : index
    %c0_15 = arith.constant 0 : index
    %12 = vector.load %arg2[%c0_12, %c0_13, %c0_14, %c0_15] : memref<1x4x2x128xf32, #tpu.memory_space<vmem>>, vector<1x1x2x128xf32>
    %13 = vector.shape_cast %12 : vector<1x1x2x128xf32> to vector<2x128xf32>
    %14 = arith.subf %13, %10 : vector<2x128xf32>
    %15 = math.exp %14 : vector<2x128xf32>
    %c0_16 = arith.constant 0 : index
    %c0_17 = arith.constant 0 : index
    %c0_18 = arith.constant 0 : index
    %16 = vector.load %arg4[%c0_16, %c0_17, %c0_18] : memref<4x2x128xf32, #tpu.memory_space<vmem>>, vector<1x2x128xf32>
    %17 = vector.shape_cast %16 : vector<1x2x128xf32> to vector<2x128xf32>
    %18 = vector.shape_cast %15 : vector<2x128xf32> to vector<1x2x128xf32>
    tpu.vector_store %arg4[%c0_16, %c0_17, %c0_18], %18 {strides = array<i32>} : memref<4x2x128xf32, #tpu.memory_space<vmem>>, vector<1x2x128xf32>,
    %19 = arith.addf %11, %15 : vector<2x128xf32>
    %c0_19 = arith.constant 0 : index
    %c1_20 = arith.constant 1 : index
    %c0_21 = arith.constant 0 : index
    %c0_22 = arith.constant 0 : index
    %20 = vector.load %arg2[%c0_19, %c1_20, %c0_21, %c0_22] : memref<1x4x2x128xf32, #tpu.memory_space<vmem>>, vector<1x1x2x128xf32>
    %21 = vector.shape_cast %20 : vector<1x1x2x128xf32> to vector<2x128xf32>
    %22 = arith.subf %21, %10 : vector<2x128xf32>
    %23 = math.exp %22 : vector<2x128xf32>
    %c1_23 = arith.constant 1 : index
    %c0_24 = arith.constant 0 : index
    %c0_25 = arith.constant 0 : index
    %24 = vector.load %arg4[%c1_23, %c0_24, %c0_25] : memref<4x2x128xf32, #tpu.memory_space<vmem>>, vector<1x2x128xf32>
    %25 = vector.shape_cast %24 : vector<1x2x128xf32> to vector<2x128xf32>
    %26 = vector.shape_cast %23 : vector<2x128xf32> to vector<1x2x128xf32>
    tpu.vector_store %arg4[%c1_23, %c0_24, %c0_25], %26 {strides = array<i32>} : memref<4x2x128xf32, #tpu.memory_space<vmem>>, vector<1x2x128xf32>,
    %27 = arith.addf %19, %23 : vector<2x128xf32>
    %c0_26 = arith.constant 0 : index
    %c2_27 = arith.constant 2 : index
    %c0_28 = arith.constant 0 : index
    %c0_29 = arith.constant 0 : index
    %28 = vector.load %arg2[%c0_26, %c2_27, %c0_28, %c0_29] : memref<1x4x2x128xf32, #tpu.memory_space<vmem>>, vector<1x1x2x128xf32>
    %29 = vector.shape_cast %28 : vector<1x1x2x128xf32> to vector<2x128xf32>
    %30 = arith.subf %29, %10 : vector<2x128xf32>
    %31 = math.exp %30 : vector<2x128xf32>
    %c2_30 = arith.constant 2 : index
    %c0_31 = arith.constant 0 : index
    %c0_32 = arith.constant 0 : index
    %32 = vector.load %arg4[%c2_30, %c0_31, %c0_32] : memref<4x2x128xf32, #tpu.memory_space<vmem>>, vector<1x2x128xf32>
    %33 = vector.shape_cast %32 : vector<1x2x128xf32> to vector<2x128xf32>
    %34 = vector.shape_cast %31 : vector<2x128xf32> to vector<1x2x128xf32>
    tpu.vector_store %arg4[%c2_30, %c0_31, %c0_32], %34 {strides = array<i32>} : memref<4x2x128xf32, #tpu.memory_space<vmem>>, vector<1x2x128xf32>,
    %35 = arith.addf %27, %31 : vector<2x128xf32>
    %c0_33 = arith.constant 0 : index
    %c3_34 = arith.constant 3 : index
    %c0_35 = arith.constant 0 : index
    %c0_36 = arith.constant 0 : index
    %36 = vector.load %arg2[%c0_33, %c3_34, %c0_35, %c0_36] : memref<1x4x2x128xf32, #tpu.memory_space<vmem>>, vector<1x1x2x128xf32>
    %37 = vector.shape_cast %36 : vector<1x1x2x128xf32> to vector<2x128xf32>
    %38 = arith.subf %37, %10 : vector<2x128xf32>
    %39 = math.exp %38 : vector<2x128xf32>
    %c3_37 = arith.constant 3 : index
    %c0_38 = arith.constant 0 : index
    %c0_39 = arith.constant 0 : index
    %40 = vector.load %arg4[%c3_37, %c0_38, %c0_39] : memref<4x2x128xf32, #tpu.memory_space<vmem>>, vector<1x2x128xf32>
    %41 = vector.shape_cast %40 : vector<1x2x128xf32> to vector<2x128xf32>
    %42 = vector.shape_cast %39 : vector<2x128xf32> to vector<1x2x128xf32>
    tpu.vector_store %arg4[%c3_37, %c0_38, %c0_39], %42 {strides = array<i32>} : memref<4x2x128xf32, #tpu.memory_space<vmem>>, vector<1x2x128xf32>,
    %43 = arith.addf %35, %39 : vector<2x128xf32>
    %cst_40 = arith.constant 9.99999974E-6 : f32
    %44 = vector.broadcast %cst_40 : f32 to vector<2x128xf32>
    %45 = arith.mulf %44, %43 : vector<2x128xf32>
    %cst_41 = arith.constant 0.000000e+00 : f32
    %46 = vector.broadcast %cst_41 : f32 to vector<2x128xf32>
    %c0_42 = arith.constant 0 : index
    %c0_43 = arith.constant 0 : index
    %c0_44 = arith.constant 0 : index
    %47 = vector.load %arg4[%c0_42, %c0_43, %c0_44] : memref<4x2x128xf32, #tpu.memory_space<vmem>>, vector<1x2x128xf32>
    %48 = vector.shape_cast %47 : vector<1x2x128xf32> to vector<2x128xf32>
    %49 = arith.addf %48, %45 : vector<2x128xf32>
    %50 = math.log %49 : vector<2x128xf32>
    %51 = arith.addf %46, %50 : vector<2x128xf32>
    %c1_45 = arith.constant 1 : index
    %c0_46 = arith.constant 0 : index
    %c0_47 = arith.constant 0 : index
    %52 = vector.load %arg4[%c1_45, %c0_46, %c0_47] : memref<4x2x128xf32, #tpu.memory_space<vmem>>, vector<1x2x128xf32>
    %53 = vector.shape_cast %52 : vector<1x2x128xf32> to vector<2x128xf32>
    %54 = arith.addf %53, %45 : vector<2x128xf32>
    %55 = math.log %54 : vector<2x128xf32>
    %56 = arith.addf %51, %55 : vector<2x128xf32>
    %c2_48 = arith.constant 2 : index
    %c0_49 = arith.constant 0 : index
    %c0_50 = arith.constant 0 : index
    %57 = vector.load %arg4[%c2_48, %c0_49, %c0_50] : memref<4x2x128xf32, #tpu.memory_space<vmem>>, vector<1x2x128xf32>
    %58 = vector.shape_cast %57 : vector<1x2x128xf32> to vector<2x128xf32>
    %59 = arith.addf %58, %45 : vector<2x128xf32>
    %60 = math.log %59 : vector<2x128xf32>
    %61 = arith.addf %56, %60 : vector<2x128xf32>
    %c3_51 = arith.constant 3 : index
    %c0_52 = arith.constant 0 : index
    %c0_53 = arith.constant 0 : index
    %62 = vector.load %arg4[%c3_51, %c0_52, %c0_53] : memref<4x2x128xf32, #tpu.memory_space<vmem>>, vector<1x2x128xf32>
    %63 = vector.shape_cast %62 : vector<1x2x128xf32> to vector<2x128xf32>
    %64 = arith.addf %63, %45 : vector<2x128xf32>
    %65 = math.log %64 : vector<2x128xf32>
    %66 = arith.addf %61, %65 : vector<2x128xf32>
    %67 = math.log %43 : vector<2x128xf32>
    %cst_54 = arith.constant 4.000000e+00 : f32
    %68 = vector.broadcast %cst_54 : f32 to vector<2x128xf32>
    %69 = arith.mulf %68, %67 : vector<2x128xf32>
    %70 = arith.subf %69, %66 : vector<2x128xf32>
    %cst_55 = arith.constant dense<0.000000e+00> : vector<128xf32>
    %71 = vector.multi_reduction <add>, %70, %cst_55 [0] : vector<2x128xf32> to vector<128xf32>
    %72 = vector.shape_cast %71 : vector<128xf32> to vector<1x128xf32>
    %c0_56 = arith.constant 0 : index
    %c0_57 = arith.constant 0 : index
    %c0_58 = arith.constant 0 : index
    %73 = vector.load %arg3[%c0_56, %c0_57, %c0_58] : memref<1x1x128xf32, #tpu.memory_space<vmem>>, vector<1x1x128xf32>
    %74 = vector.shape_cast %73 : vector<1x1x128xf32> to vector<1x128xf32>
    %75 = vector.shape_cast %72 : vector<1x128xf32> to vector<1x1x128xf32>
    tpu.vector_store %arg3[%c0_56, %c0_57, %c0_58], %75 {strides = array<i32>} : memref<1x1x128xf32, #tpu.memory_space<vmem>>, vector<1x1x128xf32>,
    return
  }
  func.func @transform_0(%arg0: i32, %arg1: i32) -> (i32, i32, i32, i32) {
    %c0_i32 = arith.constant 0 : i32
    %c0_i32_0 = arith.constant 0 : i32
    %c0_i32_1 = arith.constant 0 : i32
    return %arg0, %c0_i32, %arg1, %c0_i32_0 : i32, i32, i32, i32
  }
  func.func @transform_1(%arg0: i32, %arg1: i32) -> (i32, i32, i32) {
    %c0_i32 = arith.constant 0 : i32
    %c0_i32_0 = arith.constant 0 : i32
    return %arg0, %arg1, %c0_i32 : i32, i32, i32
  }
}

</mosaic_0001>

<bundles_post_ra>
// kernel: adv_loss.1
= control target key start
LH: loop header
LB: loop body
LE: loop exit
PB: predicated region body
PF: predicated region fallthrough
CT: control target
= control target key end

     0   :  { %s377_s6 = smov 0   ;;  %s379_s7 = smov 0   ;;  %s414_s0 = inlined_call_operand.vmem [shape: f32[2,4,2,128], index: 0, kind: input, shape index: {}]   ;;  %s415_s1 = inlined_call_operand.vmem [shape: f32[2,1,128], index: 1, kind: output, shape index: {}]  }
   0x1   :  { %s381_s8 = smov 0  }
   0x2 LB: > { %s23_s9 = sadd.s32 1, %s361_s7  ;;  %p289_p0 = scmp.ge.s32.totalorder %s365_s8, 1  ;;  %s365_s8 = sphi %s381_s8, %s11_s8   ;;  %s361_s7 = sphi %s379_s7, %s417_s7   ;;  %s357_s6 = sphi %s377_s6, %s416_s6  }
   0x3   : > { %p25_p1 = scmp.ge.s32.totalorder %s23_s9, 2  ;;  %p106_p2 = scmp.lt.s32.totalorder %s365_s8, 3 }
   0x5   : > { %s419_s9 = smov (%p25_p1, %s23_s9), 0  ;;  %p107_p3 = pnand %p289_p0, %p106_p2 }
   0x6   : > { %p130_p4 = scmp.lt.s32.totalorder (!%p107_p3), %s357_s6, 1 }
   0x7   : > { %110 = sbr.rel (%p107_p3) target bundleno = 76 (0x4c), region = 24 }
   0xc   : > { %s421_s6 = smov (!%p130_p4, %s357_s6), 1  ;;  %vm205_vm0 = vcmask 1041408  }
   0xd   : > { %s300_s10 = sshll.u32 %s421_s6, 3  ;;  %s143_s16 = scalar_lea.vmem %s415_s1, %s421_s6 }
   0xe   : > { %s137_s13 = scalar_lea.vmem %s414_s0, %s300_s10 }
   0xf   : > { %v144_v0 = vld [vmem:[%s137_s13] sm:$0x3]  ;;  %v292_v1 = vld [vmem:[%s137_s13 + $0x2] sm:$0x3]  ;;  %v293_v2 = vld [vmem:[%s137_s13 + $0x4] sm:$0x3] }
  0x10   : > { %v147_v3 = vmax.f32 %v144_v0, %v292_v1  ;;  %v294_v4 = vld [vmem:[%s137_s13 + $0x6] sm:$0x3]  ;;  %v295_v6 = vld [vmem:[%s137_s13 + $0x2] sm:$0x3]  ;;  %v296_v7 = vld [vmem:[%s137_s13 + $0x4] sm:$0x3] }
  0x11   : > { %v297_v8 = vld [vmem:[%s137_s13 + $0x6] sm:$0x3] }
  0x12   : > { %v150_v5 = vmax.f32 %v147_v3, %v293_v2 }
  0x14   : > { %v153_v9 = vmax.f32 %v150_v5, %v294_v4 }
  0x16   : > { %v154_v10 = vsub.f32 %v144_v0, %v153_v9  ;;  %v160_v11 = vsub.f32 %v295_v6, %v153_v9  ;;  %v167_v12 = vsub.f32 %v296_v7, %v153_v9  ;;  %v174_v13 = vsub.f32 %v297_v8, %v153_v9 }
  0x18   : > { %v155_v14 = vmul.f32 1.442695, %v154_v10  ;;  %v161_v15 = vmul.f32 1.442695, %v160_v11  ;;  %v168_v16 = vmul.f32 1.442695, %v167_v12 }
  0x19   : > { %v175_v17 = vmul.f32 1.442695, %v174_v13 }
  0x1a   : > { %325 = vpow2.f32 %v155_v14 }
  0x1b   : > { %327 = vpow2.f32 %v161_v15 }
  0x1c   : > { %329 = vpow2.f32 %v168_v16 }
  0x1d   : > { %331 = vpow2.f32 %v175_v17 }
  0x20   : > { %v326_v18 = vpop.eup %325 }
  0x21   : > { %v328_v19 = vpop.eup %327  ;;  %157 = vst [vmem:[#allocation2] sm:$0x3] %v326_v18 }
  0x22   : > { %v330_v20 = vpop.eup %329  ;;  %164 = vst [vmem:[#allocation2 + $0x2] sm:$0x3] %v328_v19  ;;  %v165_v21 = vadd.f32 %v328_v19, %v326_v18 }
  0x23   : > { %v332_v22 = vpop.eup %331  ;;  %171 = vst [vmem:[#allocation2 + $0x4] sm:$0x3] %v330_v20 }
  0x24   : > { %v172_v23 = vadd.f32 %v330_v20, %v165_v21  ;;  %178 = vst [vmem:[#allocation2 + $0x6] sm:$0x3] %v332_v22 }
  0x26   : > { %v179_v24 = vadd.f32 %v332_v22, %v172_v23 }
  0x28   : > { %v180_v25 = vmul.f32 1e-05, %v179_v24  ;;  %v181_v26 = vld [vmem:[#allocation2] sm:$0x3]  ;;  %333 = vlog2.f32 %v179_v24 }
  0x29   : > { %v186_v27 = vld [vmem:[#allocation2 + $0x2] sm:$0x3] }
  0x2a   : > { %v182_v28 = vadd.f32 %v181_v26, %v180_v25  ;;  %v187_v29 = vadd.f32 %v186_v27, %v180_v25  ;;  %v191_v30 = vld [vmem:[#allocation2 + $0x4] sm:$0x3] }
  0x2b   : > { %v192_v31 = vadd.f32 %v191_v30, %v180_v25  ;;  %v196_v32 = vld [vmem:[#allocation2 + $0x6] sm:$0x3] }
  0x2c   : > { %335 = vlog2.f32 %v182_v28  ;;  %v197_v33 = vadd.f32 %v196_v32, %v180_v25 }
  0x2d   : > { %337 = vlog2.f32 %v187_v29 }
  0x2e   : > { %339 = vlog2.f32 %v192_v31  ;;  %v334_v34 = vpop.eup %333 }
  0x2f   : > { %341 = vlog2.f32 %v197_v33  ;;  %v202_v40 = vmul.f32 0.6931472, %v334_v34 }
  0x31   : > { %v203_v46 = vmul.f32 4.0, %v202_v40 }
  0x32   : > { %v336_v35 = vpop.eup %335 }
  0x33   : > { %v338_v36 = vpop.eup %337  ;;  %v184_v37 = vmul.f32 0.6931472, %v336_v35 }
  0x34   : > { %v340_v38 = vpop.eup %339  ;;  %v189_v39 = vmul.f32 0.6931472, %v338_v36 }
  0x35   : > { %v342_v41 = vpop.eup %341  ;;  %v194_v42 = vmul.f32 0.6931472, %v340_v38 }
  0x36   : > { %v190_v43 = vadd.f32 %v189_v39, %v184_v37  ;;  %v199_v44 = vmul.f32 0.6931472, %v342_v41 }
  0x38   : > { %v195_v45 = vadd.f32 %v194_v42, %v190_v43 }
  0x3a   : > { %v200_v47 = vadd.f32 %v199_v44, %v195_v45 }
  0x3c   : > { %v204_v48 = vsub.f32 %v203_v46, %v200_v47 }
  0x3e   : > { %v206_v49 = vsel %vm205_vm0, %v204_v48, 0.0 }
  0x3f   : > { %v207_v50 = vrot.slane %v206_v49, 4 }
  0x41   : > { %v208_v51 = vadd.f32 %v207_v50, %v206_v49 }
  0x43   : > { %v209_v52 = vrot.slane %v208_v51, 2 }
  0x45   : > { %v210_v53 = vadd.f32 %v209_v52, %v208_v51 }
  0x47   : > { %v211_v54 = vrot.slane %v210_v53, 1 }
  0x49   : > { %v212_v55 = vadd.f32 %v211_v54, %v210_v53 }
  0x4b   : > { %213 = vst [vmem:[%s143_s16] sm:$0x1] %v212_v55 }
  0x4c PF: > { %s11_s8 = sadd.s32 1, %s365_s8   ;;  %s416_s6 = smov %s361_s7 }
  0x4d   : > { %p8_p5 = scmp.ge.s32.totalorder %s11_s8, 4   ;;  %s417_s7 = smov %s419_s9 }
  0x4f   :  { %10 = sbr.rel (!%p8_p5) target bundleno = 2 (0x2), region = 60 }

</bundles_post_ra>
